<compile_context>
chip_gen: v5e
topology: v5e:2x2
jax: 0.10.0
libtpu: 0.0.40
codegen_flags: <defaults>
</compile_context>

<pallas_src>
import functools

import jax
import jax.numpy as jnp
from jax.experimental import pallas as pl
from jax.experimental.pallas import tpu as pltpu


def _focal_loss_kernel(preds_ref, targets_ref, out_ref, *,
                       gamma, eps, lanes, row_tile, n_valid):
    i = pl.program_id(0)

    p = preds_ref[...].astype(jnp.float32)
    t = targets_ref[...].astype(jnp.float32)

    # preds.clamp(eps, 1 - eps)
    p = jnp.clip(p, eps, 1.0 - eps)
    omp = 1.0 - p
    lp = jnp.log(p)       # needed for the loss anyway
    l1p = jnp.log(omp)    # needed for the loss anyway

    # (1-p)**gamma / p**gamma without float pow (each pow = exp(g*log(x)) = 2 EUP ops).
    if gamma == 2.0:
        w_pos = omp * omp          # pure VALU
        w_neg = p * p
    elif gamma == 1.0:
        w_pos = omp
        w_neg = p
    elif gamma == 0.0:
        w_pos = jnp.ones_like(p)
        w_neg = jnp.ones_like(p)
    else:
        # reuse the logs already computed: only 2 extra EUP exps per element
        w_pos = jnp.exp(gamma * l1p)
        w_neg = jnp.exp(gamma * lp)

    loss = w_pos * t * lp + w_neg * (1.0 - t) * l1p

    # Zero the padded tail exactly (padding lives only at the end of the
    # flattened array) — index mask, no extra HBM traffic.
    row_ids = jax.lax.broadcasted_iota(jnp.int32, (row_tile, lanes), 0)
    lane_ids = jax.lax.broadcasted_iota(jnp.int32, (row_tile, lanes), 1)
    flat_idx = (i * row_tile + row_ids) * lanes + lane_ids
    loss = jnp.where(flat_idx < n_valid, loss, 0.0)

    # Fold row_tile rows into 8 rows of partial sums. Slices are sublane-aligned
    # full-lane slabs -> pure VALU adds; the scalar reduce is deferred to JAX.
    partial = loss[0:8]
    for k in range(1, row_tile // 8):
        partial = partial + loss[k * 8:(k + 1) * 8]

    out_ref[0] = partial


def focal_loss(preds, targets, gamma=2.0, eps=1e-07, *,
               lanes=512, row_tile=256):
    assert preds.shape == targets.shape
    assert lanes % 128 == 0 and row_tile % 8 == 0

    n_valid = 1
    for d in preds.shape:
        n_valid *= int(d)

    p_flat = preds.astype(jnp.float32).reshape(-1)
    t_flat = targets.astype(jnp.float32).reshape(-1)

    rows = pl.cdiv(n_valid, lanes)
    rows = pl.cdiv(rows, 8) * 8                    # sublane-align
    row_tile = min(row_tile, rows)                 # still a multiple of 8
    rows_padded = pl.cdiv(rows, row_tile) * row_tile
    num_tiles = rows_padded // row_tile

    pad = rows_padded * lanes - n_valid
    p2 = jnp.pad(p_flat, (0, pad)).reshape(rows_padded, lanes)
    t2 = jnp.pad(t_flat, (0, pad)).reshape(rows_padded, lanes)

    kernel = functools.partial(
        _focal_loss_kernel, gamma=float(gamma), eps=float(eps),
        lanes=lanes, row_tile=row_tile, n_valid=n_valid)

    n_transc = (2 if float(gamma) in (0.0, 1.0, 2.0) else 4) * n_valid
    cost = pl.CostEstimate(
        flops=12 * n_valid,
        transcendentals=n_transc,
        bytes_accessed=2 * n_valid * 4 + num_tiles * 8 * lanes * 4)

    partials = pl.pallas_call(
        kernel,
        out_shape=jax.ShapeDtypeStruct((num_tiles, 8, lanes), jnp.float32),
        grid=(num_tiles,),
        in_specs=[
            pl.BlockSpec((row_tile, lanes), lambda i: (i, 0)),
            pl.BlockSpec((row_tile, lanes), lambda i: (i, 0)),
        ],
        out_specs=pl.BlockSpec((1, 8, lanes), lambda i: (i, 0, 0)),
        compiler_params=pltpu.CompilerParams(
            dimension_semantics=("parallel",)),
        cost_estimate=cost,
    )(p2, t2)

    # Final (tiny) reduction + mean/negate in plain JAX.
    return -jnp.sum(partials) / jnp.float32(n_valid)


def focal_loss_ref(preds, targets, gamma=2.0, eps=1e-07):
    p = jnp.clip(preds, eps, 1.0 - eps)
    loss = ((1.0 - p) ** gamma) * targets * jnp.log(p) \
         + (p ** gamma) * (1.0 - targets) * jnp.log(1.0 - p)
    return -jnp.mean(loss)


if __name__ == "__main__":
    key = jax.random.PRNGKey(0)
    kp, kt = jax.random.split(key)

    B, C = 16, 28  # human-protein-atlas: 28 classes, multi-label
    preds = jax.nn.sigmoid(jax.random.normal(kp, (B, C), dtype=jnp.float32))
    targets = (jax.random.uniform(kt, (B, C)) > 0.5).astype(jnp.float32)

    # gamma == 2 path (squaring, zero pow/exp overhead)
    out = jax.block_until_ready(focal_loss(preds, targets, gamma=2.0))
    ref = focal_loss_ref(preds, targets, gamma=2.0)
    assert jnp.allclose(out, ref, rtol=1e-5, atol=1e-6), (out, ref)

    # arbitrary-gamma path (exp(gamma*log) reusing the logs)
    out2 = jax.block_until_ready(focal_loss(preds, targets, gamma=1.5))
    ref2 = focal_loss_ref(preds, targets, gamma=1.5)
    assert jnp.allclose(out2, ref2, rtol=1e-5, atol=1e-6), (out2, ref2)

    print("KERNEL_OK")
</pallas_src>

<mosaic_0001>
module attributes {stable_mosaic.version = 11 : i64} {
  func.func @_focal_loss_kernel(%arg0: i32, %arg1: memref<8x512xf32, #tpu.memory_space<vmem>>, %arg2: memref<8x512xf32, #tpu.memory_space<vmem>>, %arg3: memref<1x8x512xf32, #tpu.memory_space<vmem>>) attributes {dimension_semantics = [#tpu.dimension_semantics<parallel>], iteration_bounds = array<i64: 1>, scalar_prefetch = 0 : i64, scratch_operands = 0 : i64, tpu.core_type = #tpu.core_type<tc>, window_params = [{transform_indices = @transform_0, window_bounds = array<i64: 8, 512>}, {transform_indices = @transform_1, window_bounds = array<i64: 8, 512>}, {transform_indices = @transform_2, window_bounds = array<i64: 1, 8, 512>}]} {
    %c0 = arith.constant 0 : index
    %c0_0 = arith.constant 0 : index
    %0 = vector.load %arg1[%c0, %c0_0] : memref<8x512xf32, #tpu.memory_space<vmem>>, vector<8x512xf32>
    %c0_1 = arith.constant 0 : index
    %c0_2 = arith.constant 0 : index
    %1 = vector.load %arg2[%c0_1, %c0_2] : memref<8x512xf32, #tpu.memory_space<vmem>>, vector<8x512xf32>
    %cst = arith.constant 1.000000e-07 : f32
    %cst_3 = arith.constant 0.99999988 : f32
    %2 = vector.broadcast %cst : f32 to vector<8x512xf32>
    %3 = arith.maximumf %2, %0 : vector<8x512xf32>
    %4 = vector.broadcast %cst_3 : f32 to vector<8x512xf32>
    %5 = arith.minimumf %4, %3 : vector<8x512xf32>
    %cst_4 = arith.constant 1.000000e+00 : f32
    %6 = vector.broadcast %cst_4 : f32 to vector<8x512xf32>
    %7 = arith.subf %6, %5 : vector<8x512xf32>
    %8 = math.log %5 : vector<8x512xf32>
    %9 = math.log %7 : vector<8x512xf32>
    %10 = arith.mulf %7, %7 : vector<8x512xf32>
    %11 = arith.mulf %5, %5 : vector<8x512xf32>
    %12 = arith.mulf %10, %1 : vector<8x512xf32>
    %13 = arith.mulf %12, %8 : vector<8x512xf32>
    %cst_5 = arith.constant 1.000000e+00 : f32
    %14 = vector.broadcast %cst_5 : f32 to vector<8x512xf32>
    %15 = arith.subf %14, %1 : vector<8x512xf32>
    %16 = arith.mulf %11, %15 : vector<8x512xf32>
    %17 = arith.mulf %16, %9 : vector<8x512xf32>
    %18 = arith.addf %13, %17 : vector<8x512xf32>
    %19 = tpu.iota {dimensions = array<i32: 0>} : vector<8x512xi32>
    %20 = tpu.iota {dimensions = array<i32: 1>} : vector<8x512xi32>
    %c8_i32 = arith.constant 8 : i32
    %21 = arith.muli %arg0, %c8_i32 : i32
    %22 = vector.broadcast %21 : i32 to vector<8x512xi32>
    %23 = arith.addi %22, %19 : vector<8x512xi32>
    %c512_i32 = arith.constant 512 : i32
    %24 = vector.broadcast %c512_i32 : i32 to vector<8x512xi32>
    %25 = arith.muli %23, %24 : vector<8x512xi32>
    %26 = arith.addi %25, %20 : vector<8x512xi32>
    %c448_i32 = arith.constant 448 : i32
    %27 = vector.broadcast %c448_i32 : i32 to vector<8x512xi32>
    %28 = arith.cmpi slt, %26, %27 : vector<8x512xi32>
    %cst_6 = arith.constant 0.000000e+00 : f32
    %29 = vector.broadcast %cst_6 : f32 to vector<8x512xf32>
    %30 = arith.select %28, %18, %29 : vector<8x512xi1>, vector<8x512xf32>
    %c0_7 = arith.constant 0 : index
    %c0_8 = arith.constant 0 : index
    %c0_9 = arith.constant 0 : index
    %31 = vector.load %arg3[%c0_7, %c0_8, %c0_9] : memref<1x8x512xf32, #tpu.memory_space<vmem>>, vector<1x8x512xf32>
    %32 = vector.shape_cast %31 : vector<1x8x512xf32> to vector<8x512xf32>
    %33 = vector.shape_cast %30 : vector<8x512xf32> to vector<1x8x512xf32>
    tpu.vector_store %arg3[%c0_7, %c0_8, %c0_9], %33 {strides = array<i32>} : memref<1x8x512xf32, #tpu.memory_space<vmem>>, vector<1x8x512xf32>,
    return
  }
  func.func @transform_0(%arg0: i32) -> (i32, i32) {
    %c0_i32 = arith.constant 0 : i32
    %c0_i32_0 = arith.constant 0 : i32
    return %arg0, %c0_i32 : i32, i32
  }
  func.func @transform_1(%arg0: i32) -> (i32, i32) {
    %c0_i32 = arith.constant 0 : i32
    %c0_i32_0 = arith.constant 0 : i32
    return %arg0, %c0_i32 : i32, i32
  }
  func.func @transform_2(%arg0: i32) -> (i32, i32, i32) {
    %c0_i32 = arith.constant 0 : i32
    %c0_i32_0 = arith.constant 0 : i32
    %c0_i32_1 = arith.constant 0 : i32
    return %arg0, %c0_i32, %c0_i32_0 : i32, i32, i32
  }
}

</mosaic_0001>

<bundles_post_ra>
// kernel: tpu_custom_call.1
= control target key start
LH: loop header
LB: loop body
LE: loop exit
PB: predicated region body
PF: predicated region fallthrough
CT: control target
= control target key end

     0   :  { %7 = vsyncpa [#allocation3], 0  ;;  %s277_s0 = inlined_call_operand.hbm [shape: f32[8,512], index: 0, kind: input, shape index: {}]   ;;  %s278_s1 = inlined_call_operand.hbm [shape: f32[8,512], index: 1, kind: input, shape index: {}]   ;;  %s279_s2 = inlined_call_operand.hbm [shape: f32[1,8,512], index: 2, kind: output, shape index: {}]  }
   0x1   :  { %8 = vsyncpa [#allocation6], 0 }
   0x2   :  { %9 = vsyncpa [#allocation4], 0  ;;  %s15_s11 = sshll.u32 %s277_s0, 4  ;;  %s250_s12 = smov [#allocation2]   ;;  %s16_s11 = int_to_ptr.hbm [resolvable:$true] %s15_s11 }
   0x3   :  { %s17_s13 = sshll.u32 %s250_s12, 4  ;;  %s26_s16 = sshll.u32 %s278_s1, 4  ;;  %s18_s13 = int_to_ptr.vmem [resolvable:$true] %s17_s13  ;;  %s27_s16 = int_to_ptr.hbm [resolvable:$true] %s26_s16 }
   0x4   :  { %20 = dma.hbm_to_vmem [thread:$0]  %s16_s11, 512, %s18_s13, [#allocation3]  }
   0x5   :  { %s251_s17 = smov [#allocation5]  }
   0x6   :  { %s28_s18 = sshll.u32 %s251_s17, 4  ;;  %s29_s18 = int_to_ptr.vmem [resolvable:$true] %s28_s18 }
   0x7   :  { %31 = dma.hbm_to_vmem [thread:$0]  %s27_s16, 512, %s29_s18, [#allocation6]  }
   0x8   :  { %244 = dma.done.wait [#allocation3], 512  }
   0x9   :  { %245 = vsyncadd [#allocation3], 4294966784 }
   0xa   :  { %246 = dma.done.wait [#allocation6], 512  }
   0xb   :  { %247 = vsyncadd [#allocation6], 4294966784  ;;  %v108_v0 = vlaneseq  ;;  %v40_v1 = vld [vmem:[#allocation2] sm:$0xff]  ;;  %v41_v3 = vld [vmem:[#allocation2 + $0x8] sm:$0xff]  ;;  %s252_s0 = smov [#allocation7]   ;;  %s142_s21 = sshll.u32 %s279_s2, 4  ;;  %s143_s21 = int_to_ptr.hbm [resolvable:$true] %s142_s21 }
   0xc   :  { %v48_v4 = vmax.f32 %v40_v1, 1e-07  ;;  %v49_v6 = vmax.f32 %v41_v3, 1e-07  ;;  %v42_v7 = vld [vmem:[#allocation2 + $0x10] sm:$0xff]  ;;  %v43_v10 = vld [vmem:[#allocation2 + $0x18] sm:$0xff] }
   0xd   :  { %v109_v2 = vshrl.u32 %v108_v0, 7  ;;  %v111_v5 = vand.u32 127, %v108_v0  ;;  %v50_v9 = vmax.f32 %v42_v7, 1e-07  ;;  %v51_v13 = vmax.f32 %v43_v10, 1e-07 }
   0xe   :  { %v52_v8 = vmin.f32 %v48_v4, 0.9999999  ;;  %v53_v12 = vmin.f32 %v49_v6, 0.9999999  ;;  %v44_v14 = vld [vmem:[#allocation5] sm:$0xff]  ;;  %v45_v18 = vld [vmem:[#allocation5 + $0x8] sm:$0xff] }
   0xf   :  { %v118_v11 = vmul.u32 512, %v109_v2  ;;  %v112_v16 = vadd.s32 128, %v111_v5  ;;  %v54_v17 = vmin.f32 %v50_v9, 0.9999999  ;;  %v113_v20 = vadd.s32 256, %v111_v5  ;;  %v46_v28 = vld [vmem:[#allocation5 + $0x10] sm:$0xff] }
  0x10   :  { %v56_v15 = vsub.f32 1.0, %v52_v8  ;;  %156 = vlog2.f32 %v52_v8  ;;  %v57_v19 = vsub.f32 1.0, %v53_v12  ;;  %v55_v21 = vmin.f32 %v51_v13, 0.9999999  ;;  %v47_v35 = vld [vmem:[#allocation5 + $0x18] sm:$0xff]  ;;  %s140_s1 = sshll.u32 %s252_s0, 4  ;;  %s141_s1 = int_to_ptr.vmem [resolvable:$true] %s140_s1 }
  0x11   :  { %158 = vlog2.f32 %v53_v12  ;;  %v58_v23 = vsub.f32 1.0, %v54_v17  ;;  %v114_v24 = vadd.s32 384, %v111_v5  ;;  %v80_v25 = vmul.f32 %v52_v8, %v52_v8 }
  0x12   :  { %160 = vlog2.f32 %v56_v15  ;;  %v76_v22 = vmul.f32 %v56_v15, %v56_v15  ;;  %v92_v26 = vsub.f32 1.0, %v44_v14  ;;  %v77_v27 = vmul.f32 %v57_v19, %v57_v19 }
  0x13   :  { %162 = vlog2.f32 %v57_v19  ;;  %v81_v29 = vmul.f32 %v53_v12, %v53_v12  ;;  %v93_v30 = vsub.f32 1.0, %v45_v18  ;;  %v59_v31 = vsub.f32 1.0, %v55_v21 }
  0x14   :  { %164 = vlog2.f32 %v54_v17  ;;  %v84_v32 = vmul.f32 %v76_v22, %v44_v14  ;;  %v119_v33 = vadd.s32 %v118_v11, %v111_v5  ;;  %v78_v34 = vmul.f32 %v58_v23, %v58_v23 }
  0x15   :  { %166 = vlog2.f32 %v58_v23  ;;  %v85_v37 = vmul.f32 %v77_v27, %v45_v18  ;;  %v82_v38 = vmul.f32 %v54_v17, %v54_v17  ;;  %v94_v39 = vsub.f32 1.0, %v46_v28 }
  0x16   :  { %v157_v36 = vpop.eup %156  ;;  %168 = vlog2.f32 %v55_v21  ;;  %v96_v42 = vmul.f32 %v92_v26, %v80_v25  ;;  %v79_v43 = vmul.f32 %v59_v31, %v59_v31  ;;  %v97_v46 = vmul.f32 %v93_v30, %v81_v29 }
  0x17   :  { %v159_v40 = vpop.eup %158  ;;  %v61_v41 = vmul.f32 0.6931472, %v157_v36  ;;  %170 = vlog2.f32 %v59_v31  ;;  %v83_v47 = vmul.f32 %v55_v21, %v55_v21  ;;  %v95_v48 = vsub.f32 1.0, %v47_v35 }
  0x18   :  { %v161_v44 = vpop.eup %160  ;;  %v63_v45 = vmul.f32 0.6931472, %v159_v40  ;;  %v120_v52 = vadd.s32 %v118_v11, %v112_v16  ;;  %v86_v53 = vmul.f32 %v78_v34, %v46_v28  ;;  %v98_v57 = vmul.f32 %v94_v39, %v82_v38 }
  0x19   :  { %v163_v49 = vpop.eup %162  ;;  %v69_v50 = vmul.f32 0.6931472, %v161_v44  ;;  %v88_v51 = vmul.f32 %v84_v32, %v61_v41  ;;  %v121_v58 = vadd.s32 %v118_v11, %v113_v20  ;;  %v87_v62 = vmul.f32 %v79_v43, %v47_v35 }
  0x1a   :  { %v165_v54 = vpop.eup %164  ;;  %v71_v55 = vmul.f32 0.6931472, %v163_v49  ;;  %v89_v56 = vmul.f32 %v85_v37, %v63_v45  ;;  %v122_v63 = vadd.s32 %v118_v11, %v114_v24  ;;  %vm123_vm0 = vcmp.lt.s32.totalorder %v119_v33, 448 }
  0x1b   :  { %v167_v59 = vpop.eup %166  ;;  %v100_v60 = vmul.f32 %v96_v42, %v69_v50  ;;  %v65_v61 = vmul.f32 0.6931472, %v165_v54  ;;  %v99_v3 = vmul.f32 %v95_v48, %v83_v47  ;;  %vm124_vm1 = vcmp.lt.s32.totalorder %v120_v52, 448 }
  0x1c   :  { %v169_v0 = vpop.eup %168  ;;  %v101_v1 = vmul.f32 %v97_v46, %v71_v55  ;;  %v73_v2 = vmul.f32 0.6931472, %v167_v59  ;;  %vm125_vm2 = vcmp.lt.s32.totalorder %v121_v58, 448  ;;  %vm126_vm3 = vcmp.lt.s32.totalorder %v122_v63, 448 }
  0x1d   :  { %v171_v4 = vpop.eup %170  ;;  %v104_v5 = vadd.f32 %v100_v60, %v88_v51  ;;  %v90_v6 = vmul.f32 %v86_v53, %v65_v61  ;;  %v67_v7 = vmul.f32 0.6931472, %v169_v0 }
  0x1e   :  { %v105_v8 = vadd.f32 %v101_v1, %v89_v56  ;;  %v102_v9 = vmul.f32 %v98_v57, %v73_v2  ;;  %v75_v10 = vmul.f32 0.6931472, %v171_v4 }
  0x1f   :  { %v127_v12 = vsel %vm123_vm0, %v104_v5, 0.0  ;;  %v91_v13 = vmul.f32 %v87_v62, %v67_v7 }
  0x20   :  { %131 = vst [vmem:[#allocation7] sm:$0xff] %v127_v12  ;;  %v128_v14 = vsel %vm124_vm1, %v105_v8, 0.0  ;;  %v106_v15 = vadd.f32 %v102_v9, %v90_v6  ;;  %v103_v11 = vmul.f32 %v99_v3, %v75_v10 }
  0x21   :  { %132 = vst [vmem:[#allocation7 + $0x8] sm:$0xff] %v128_v14 }
  0x22   :  { %v129_v16 = vsel %vm125_vm2, %v106_v15, 0.0  ;;  %v107_v17 = vadd.f32 %v103_v11, %v91_v13 }
  0x23   :  { %133 = vst [vmem:[#allocation7 + $0x10] sm:$0xff] %v129_v16 }
  0x24   :  { %v130_v18 = vsel %vm126_vm3, %v107_v17, 0.0 }
  0x25   :  { %134 = vst [vmem:[#allocation7 + $0x18] sm:$0xff] %v130_v18 }
  0x26   :  { %145 = dma.vmem_to_hbm [thread:$0]  %s141_s1, 512, %s143_s21, [#allocation4]  }
  0x27   :  { %248 = dma.done.wait [#allocation4], 512  }
  0x28   :  { %249 = vsyncadd [#allocation4], 4294966784 }
  0x29   :  { %150 = vsyncpa [#allocation3], 1 }
  0x2a   :  { %151 = vsyncpa [#allocation6], 1 }
  0x2b   :  { %152 = vsyncpa [#allocation4], 1 }

</bundles_post_ra>
